<compile_context>
chip_gen: v5e
topology: v5e:2x2
jax: 0.10.0
libtpu: 0.0.40
codegen_flags: <defaults>
</compile_context>

<pallas_src>
import functools

import jax
import jax.numpy as jnp
from jax.experimental import pallas as pl
from jax.experimental.pallas import tpu as pltpu


def _conv_stats_kernel(x_ref, w_ref, b_ref, y_ref, sum_ref, sumsq_ref, *, H, W):
    """Pass 1: LeakyReLU + 3x3 conv (9 shifted matmuls) + per-channel sum / sumsq."""
    Wp = W + 2                    # padded width
    L = H * Wp                    # flattened (row-padded) output length
    cout = y_ref.shape[0]

    a = x_ref[...]                                     # (Cin, (H+3)*(W+2)) bf16
    a = jnp.where(a > 0, a, a * 0.2)                   # LeakyReLU(0.2) before conv
                                                       # (lrelu(0)==0 keeps padding)

    acc = jnp.zeros((cout, L), jnp.float32)
    for k in range(9):                                 # static unroll over 3x3 taps
        kh, kw = k // 3, k % 3
        sh = kh * Wp + kw                              # flat shift of this tap
        acc = acc + jnp.dot(w_ref[k], a[:, sh:sh + L],
                            preferred_element_type=jnp.float32)
    acc = acc + b_ref[...]                             # conv bias (Cout,1), lane bcast

    y_ref[...] = acc                                   # pre-BN conv out (lane-dense)

    # Per-channel batch statistics over the *valid* spatial columns only
    # (columns with (p mod (W+2)) >= W are padding artifacts, discarded later).
    col = jax.lax.broadcasted_iota(jnp.int32, (cout, L), 1)
    valid = (col % Wp) < W
    s1 = jnp.sum(jnp.where(valid, acc, 0.0), axis=1, keepdims=True)
    s2 = jnp.sum(jnp.where(valid, acc * acc, 0.0), axis=1, keepdims=True)

    @pl.when(pl.program_id(0) == 0)
    def _():
        sum_ref[...] = jnp.zeros_like(sum_ref)
        sumsq_ref[...] = jnp.zeros_like(sumsq_ref)

    sum_ref[...] += s1
    sumsq_ref[...] += s2


def _bn_noise_kernel(y_ref, sum_ref, sumsq_ref, g_ref, be_ref, noise_ref,
                     xbn_ref, out_ref, *, count, eps):
    """Pass 2: BatchNorm (global batch stats, biased var) + Gaussian-noise add."""
    acc = y_ref[...]                                   # (Cout, L) f32
    inv_n = 1.0 / count
    mean = sum_ref[...] * inv_n                        # (Cout, 1)
    var = sumsq_ref[...] * inv_n - mean * mean         # E[x^2] - mean^2 (biased)
    inv = jax.lax.rsqrt(var + eps)
    scale = g_ref[...] * inv
    shift = be_ref[...] - scale * mean
    xbn = acc * scale + shift
    xbn_ref[...] = xbn
    out_ref[...] = xbn + noise_ref[...]


def noise_forward(x_nchw, w_oihw, bias, gamma, beta, seed, *, eps=1e-5):
    """Forward pass of `Noise`. x_nchw: (N, 2*Cd, H, W). Returns (x_bn, x_bn+noise), NCHW."""
    N, Cin, H, W = x_nchw.shape
    Cout = w_oihw.shape[0]
    assert w_oihw.shape == (Cout, Cin, 3, 3)

    Wp = W + 2
    P = (H + 3) * Wp   # flat padded length per image (1 top + 2 bottom rows, 1+1 cols)
    L = H * Wp         # flat output length per image (cols >= W discarded by wrapper)

    # ---- glue: pad + flatten (pure layout; no 9x blow-up), bf16 MXU operands ----
    x_pad = jnp.pad(x_nchw.astype(jnp.bfloat16), ((0, 0), (0, 0), (1, 2), (1, 1)))
    x_flat = x_pad.reshape(N, Cin, P)                                  # (N, Cin, P)
    w_taps = jnp.transpose(w_oihw, (2, 3, 0, 1)).reshape(9, Cout, Cin)
    w_taps = w_taps.astype(jnp.bfloat16)                               # (9, Cout, Cin)
    b2 = bias.reshape(Cout, 1).astype(jnp.float32)
    g2 = gamma.reshape(Cout, 1).astype(jnp.float32)
    be2 = beta.reshape(Cout, 1).astype(jnp.float32)

    # TODO(synk): on TPU hardware this noise can be drawn in-kernel with
    # pltpu.prng_seed(seed + program_id) / prng_random_bits + a Box-Muller sin/cos
    # pair (halves EUP work and removes this HBM stream), but those primitives have
    # no interpret/CPU lowering, so we stream precomputed N(0,1) noise instead.
    noise = jax.random.normal(jax.random.PRNGKey(seed), (N, Cout, L), dtype=jnp.float32)

    # ---- pass 1: conv + global per-channel stats (grid over batch, accumulating) ----
    kernel1 = functools.partial(_conv_stats_kernel, H=H, W=W)
    y_flat, ch_sum, ch_sumsq = pl.pallas_call(
        kernel1,
        grid=(N,),
        in_specs=[
            pl.BlockSpec((None, Cin, P), lambda n: (n, 0, 0)),     # padded image slab
            pl.BlockSpec((9, Cout, Cin), lambda n: (0, 0, 0)),     # conv weights
            pl.BlockSpec((Cout, 1), lambda n: (0, 0)),             # conv bias
        ],
        out_specs=(
            pl.BlockSpec((None, Cout, L), lambda n: (n, 0, 0)),    # pre-BN conv out
            pl.BlockSpec((Cout, 1), lambda n: (0, 0)),             # resident sum acc
            pl.BlockSpec((Cout, 1), lambda n: (0, 0)),             # resident sumsq acc
        ),
        out_shape=(
            jax.ShapeDtypeStruct((N, Cout, L), jnp.float32),
            jax.ShapeDtypeStruct((Cout, 1), jnp.float32),
            jax.ShapeDtypeStruct((Cout, 1), jnp.float32),
        ),
        compiler_params=pltpu.CompilerParams(
            dimension_semantics=("arbitrary",),        # stats accumulate across grid
            vmem_limit_bytes=32 * 1024 * 1024),        # safe on v5e/v6e/v7x (64 MiB phys)
    )(x_flat, w_taps, b2)

    # ---- pass 2: normalize + add noise (embarrassingly parallel over images) ----
    kernel2 = functools.partial(_bn_noise_kernel, count=float(N * H * W), eps=eps)
    xbn_flat, out_flat = pl.pallas_call(
        kernel2,
        grid=(N,),
        in_specs=[
            pl.BlockSpec((None, Cout, L), lambda n: (n, 0, 0)),
            pl.BlockSpec((Cout, 1), lambda n: (0, 0)),
            pl.BlockSpec((Cout, 1), lambda n: (0, 0)),
            pl.BlockSpec((Cout, 1), lambda n: (0, 0)),
            pl.BlockSpec((Cout, 1), lambda n: (0, 0)),
            pl.BlockSpec((None, Cout, L), lambda n: (n, 0, 0)),
        ],
        out_specs=(
            pl.BlockSpec((None, Cout, L), lambda n: (n, 0, 0)),
            pl.BlockSpec((None, Cout, L), lambda n: (n, 0, 0)),
        ),
        out_shape=(
            jax.ShapeDtypeStruct((N, Cout, L), jnp.float32),
            jax.ShapeDtypeStruct((N, Cout, L), jnp.float32),
        ),
        compiler_params=pltpu.CompilerParams(
            dimension_semantics=("parallel",),         # shards over 2 TCs on v7x
            vmem_limit_bytes=32 * 1024 * 1024),
    )(y_flat, ch_sum, ch_sumsq, g2, be2, noise)

    # ---- glue: drop the padded columns, back to NCHW (no transposes needed) ----
    x_bn = xbn_flat.reshape(N, Cout, H, Wp)[..., :W]
    out = out_flat.reshape(N, Cout, H, Wp)[..., :W]
    return x_bn, out


def _reference_bn(x, w, b, gamma, beta, eps=1e-5):
    """Pure-JAX reference of the pre-noise branch (lrelu -> conv -> train-mode BN)."""
    a = jnp.where(x > 0, x, 0.2 * x)
    y = jax.lax.conv_general_dilated(
        a, w, window_strides=(1, 1), padding=((1, 1), (1, 1)),
        dimension_numbers=("NCHW", "OIHW", "NCHW"))
    y = y + b[None, :, None, None]
    mean = jnp.mean(y, axis=(0, 2, 3), keepdims=True)
    var = jnp.mean((y - mean) ** 2, axis=(0, 2, 3), keepdims=True)
    return (gamma[None, :, None, None] * (y - mean) * jax.lax.rsqrt(var + eps)
            + beta[None, :, None, None])


if __name__ == "__main__":
    input_dim = 4
    N, H, W = 2, 16, 16
    Cin, Cout = 2 * input_dim, input_dim

    key = jax.random.PRNGKey(0)
    kx, kw, kb = jax.random.split(key, 3)

    x = jax.random.normal(kx, (N, Cin, H, W), dtype=jnp.float32)        # NCHW like torch
    conv_w = 0.05 * jax.random.normal(kw, (Cout, Cin, 3, 3), dtype=jnp.float32)  # OIHW
    conv_b = 0.05 * jax.random.normal(kb, (Cout,), dtype=jnp.float32)
    bn_gamma = jnp.ones((Cout,), jnp.float32)
    bn_beta = jnp.zeros((Cout,), jnp.float32)

    x_bn, output = noise_forward(x, conv_w, conv_b, bn_gamma, bn_beta, seed=1234)
    jax.block_until_ready((x_bn, output))

    assert x_bn.shape == (N, Cout, H, W) and output.shape == (N, Cout, H, W)
    assert bool(jnp.all(jnp.isfinite(x_bn))) and bool(jnp.all(jnp.isfinite(output)))

    # Pre-noise branch vs pure-JAX reference (loose tol: bf16 MXU operands).
    ref_bn = _reference_bn(x, conv_w, conv_b, bn_gamma, bn_beta)
    assert float(jnp.max(jnp.abs(x_bn - ref_bn))) < 5e-2

    # The injected noise should be approximately standard normal.
    nz = (output - x_bn).ravel()
    assert abs(float(jnp.mean(nz))) < 0.15 and abs(float(jnp.std(nz)) - 1.0) < 0.15

    print("KERNEL_OK")
</pallas_src>

<mosaic_0001>
module attributes {stable_mosaic.version = 11 : i64} {
  func.func @_conv_stats_kernel(%arg0: i32, %arg1: memref<1x8x342xbf16, #tpu.memory_space<vmem>>, %arg2: memref<9x4x8xbf16, #tpu.memory_space<vmem>>, %arg3: memref<4x1xf32, #tpu.memory_space<vmem>>, %arg4: memref<1x4x288xf32, #tpu.memory_space<vmem>>, %arg5: memref<4x1xf32, #tpu.memory_space<vmem>>, %arg6: memref<4x1xf32, #tpu.memory_space<vmem>>) attributes {dimension_semantics = [#tpu.dimension_semantics<arbitrary>], iteration_bounds = array<i64: 2>, scalar_prefetch = 0 : i64, scratch_operands = 0 : i64, tpu.core_type = #tpu.core_type<tc>, window_params = [{transform_indices = @transform_0, window_bounds = array<i64: 1, 8, 342>}, {pipeline_mode = #tpu.pipeline_mode<synchronous>, transform_indices = @transform_1, window_bounds = array<i64: 9, 4, 8>}, {pipeline_mode = #tpu.pipeline_mode<synchronous>, transform_indices = @transform_2, window_bounds = array<i64: 4, 1>}, {transform_indices = @transform_3, window_bounds = array<i64: 1, 4, 288>}, {pipeline_mode = #tpu.pipeline_mode<synchronous>, transform_indices = @transform_4, window_bounds = array<i64: 4, 1>}, {pipeline_mode = #tpu.pipeline_mode<synchronous>, transform_indices = @transform_5, window_bounds = array<i64: 4, 1>}]} {
    %c0 = arith.constant 0 : index
    %c0_0 = arith.constant 0 : index
    %c0_1 = arith.constant 0 : index
    %0 = vector.load %arg1[%c0, %c0_0, %c0_1] : memref<1x8x342xbf16, #tpu.memory_space<vmem>>, vector<1x8x342xbf16>
    %1 = vector.shape_cast %0 : vector<1x8x342xbf16> to vector<8x342xbf16>
    %cst = arith.constant 0.000000e+00 : bf16
    %2 = vector.broadcast %cst : bf16 to vector<8x342xbf16>
    %3 = arith.cmpf ogt, %1, %2 : vector<8x342xbf16>
    %cst_2 = arith.constant 2.001950e-01 : bf16
    %4 = vector.broadcast %cst_2 : bf16 to vector<8x342xbf16>
    %5 = arith.mulf %1, %4 : vector<8x342xbf16>
    %6 = arith.select %3, %1, %5 : vector<8x342xi1>, vector<8x342xbf16>
    %cst_3 = arith.constant 0.000000e+00 : f32
    %7 = vector.broadcast %cst_3 : f32 to vector<4x288xf32>
    %c0_4 = arith.constant 0 : index
    %c0_5 = arith.constant 0 : index
    %c0_6 = arith.constant 0 : index
    %8 = vector.load %arg2[%c0_4, %c0_5, %c0_6] : memref<9x4x8xbf16, #tpu.memory_space<vmem>>, vector<1x4x8xbf16>
    %9 = vector.shape_cast %8 : vector<1x4x8xbf16> to vector<4x8xbf16>
    %10 = vector.extract_strided_slice %6 {offsets = [0, 0], sizes = [8, 288], strides = [1, 1]} : vector<8x342xbf16> to vector<8x288xbf16>
    %cst_7 = arith.constant dense<0.000000e+00> : vector<4x288xf32>
    %11 = tpu.matmul %9, %10, %cst_7 {dimension_numbers = #tpu.dot_dimension_numbers<[1], [0], [0], [1], [0, 0, 1, 1], [], []>} : vector<4x8xbf16>, vector<8x288xbf16>, vector<4x288xf32> -> vector<4x288xf32>
    %12 = arith.addf %7, %11 : vector<4x288xf32>
    %c1 = arith.constant 1 : index
    %c0_8 = arith.constant 0 : index
    %c0_9 = arith.constant 0 : index
    %13 = vector.load %arg2[%c1, %c0_8, %c0_9] : memref<9x4x8xbf16, #tpu.memory_space<vmem>>, vector<1x4x8xbf16>
    %14 = vector.shape_cast %13 : vector<1x4x8xbf16> to vector<4x8xbf16>
    %15 = vector.extract_strided_slice %6 {offsets = [0, 1], sizes = [8, 288], strides = [1, 1]} : vector<8x342xbf16> to vector<8x288xbf16>
    %cst_10 = arith.constant dense<0.000000e+00> : vector<4x288xf32>
    %16 = tpu.matmul %14, %15, %cst_10 {dimension_numbers = #tpu.dot_dimension_numbers<[1], [0], [0], [1], [0, 0, 1, 1], [], []>} : vector<4x8xbf16>, vector<8x288xbf16>, vector<4x288xf32> -> vector<4x288xf32>
    %17 = arith.addf %12, %16 : vector<4x288xf32>
    %c2 = arith.constant 2 : index
    %c0_11 = arith.constant 0 : index
    %c0_12 = arith.constant 0 : index
    %18 = vector.load %arg2[%c2, %c0_11, %c0_12] : memref<9x4x8xbf16, #tpu.memory_space<vmem>>, vector<1x4x8xbf16>
    %19 = vector.shape_cast %18 : vector<1x4x8xbf16> to vector<4x8xbf16>
    %20 = vector.extract_strided_slice %6 {offsets = [0, 2], sizes = [8, 288], strides = [1, 1]} : vector<8x342xbf16> to vector<8x288xbf16>
    %cst_13 = arith.constant dense<0.000000e+00> : vector<4x288xf32>
    %21 = tpu.matmul %19, %20, %cst_13 {dimension_numbers = #tpu.dot_dimension_numbers<[1], [0], [0], [1], [0, 0, 1, 1], [], []>} : vector<4x8xbf16>, vector<8x288xbf16>, vector<4x288xf32> -> vector<4x288xf32>
    %22 = arith.addf %17, %21 : vector<4x288xf32>
    %c3 = arith.constant 3 : index
    %c0_14 = arith.constant 0 : index
    %c0_15 = arith.constant 0 : index
    %23 = vector.load %arg2[%c3, %c0_14, %c0_15] : memref<9x4x8xbf16, #tpu.memory_space<vmem>>, vector<1x4x8xbf16>
    %24 = vector.shape_cast %23 : vector<1x4x8xbf16> to vector<4x8xbf16>
    %25 = vector.extract_strided_slice %6 {offsets = [0, 18], sizes = [8, 288], strides = [1, 1]} : vector<8x342xbf16> to vector<8x288xbf16>
    %cst_16 = arith.constant dense<0.000000e+00> : vector<4x288xf32>
    %26 = tpu.matmul %24, %25, %cst_16 {dimension_numbers = #tpu.dot_dimension_numbers<[1], [0], [0], [1], [0, 0, 1, 1], [], []>} : vector<4x8xbf16>, vector<8x288xbf16>, vector<4x288xf32> -> vector<4x288xf32>
    %27 = arith.addf %22, %26 : vector<4x288xf32>
    %c4 = arith.constant 4 : index
    %c0_17 = arith.constant 0 : index
    %c0_18 = arith.constant 0 : index
    %28 = vector.load %arg2[%c4, %c0_17, %c0_18] : memref<9x4x8xbf16, #tpu.memory_space<vmem>>, vector<1x4x8xbf16>
    %29 = vector.shape_cast %28 : vector<1x4x8xbf16> to vector<4x8xbf16>
    %30 = vector.extract_strided_slice %6 {offsets = [0, 19], sizes = [8, 288], strides = [1, 1]} : vector<8x342xbf16> to vector<8x288xbf16>
    %cst_19 = arith.constant dense<0.000000e+00> : vector<4x288xf32>
    %31 = tpu.matmul %29, %30, %cst_19 {dimension_numbers = #tpu.dot_dimension_numbers<[1], [0], [0], [1], [0, 0, 1, 1], [], []>} : vector<4x8xbf16>, vector<8x288xbf16>, vector<4x288xf32> -> vector<4x288xf32>
    %32 = arith.addf %27, %31 : vector<4x288xf32>
    %c5 = arith.constant 5 : index
    %c0_20 = arith.constant 0 : index
    %c0_21 = arith.constant 0 : index
    %33 = vector.load %arg2[%c5, %c0_20, %c0_21] : memref<9x4x8xbf16, #tpu.memory_space<vmem>>, vector<1x4x8xbf16>
    %34 = vector.shape_cast %33 : vector<1x4x8xbf16> to vector<4x8xbf16>
    %35 = vector.extract_strided_slice %6 {offsets = [0, 20], sizes = [8, 288], strides = [1, 1]} : vector<8x342xbf16> to vector<8x288xbf16>
    %cst_22 = arith.constant dense<0.000000e+00> : vector<4x288xf32>
    %36 = tpu.matmul %34, %35, %cst_22 {dimension_numbers = #tpu.dot_dimension_numbers<[1], [0], [0], [1], [0, 0, 1, 1], [], []>} : vector<4x8xbf16>, vector<8x288xbf16>, vector<4x288xf32> -> vector<4x288xf32>
    %37 = arith.addf %32, %36 : vector<4x288xf32>
    %c6 = arith.constant 6 : index
    %c0_23 = arith.constant 0 : index
    %c0_24 = arith.constant 0 : index
    %38 = vector.load %arg2[%c6, %c0_23, %c0_24] : memref<9x4x8xbf16, #tpu.memory_space<vmem>>, vector<1x4x8xbf16>
    %39 = vector.shape_cast %38 : vector<1x4x8xbf16> to vector<4x8xbf16>
    %40 = vector.extract_strided_slice %6 {offsets = [0, 36], sizes = [8, 288], strides = [1, 1]} : vector<8x342xbf16> to vector<8x288xbf16>
    %cst_25 = arith.constant dense<0.000000e+00> : vector<4x288xf32>
    %41 = tpu.matmul %39, %40, %cst_25 {dimension_numbers = #tpu.dot_dimension_numbers<[1], [0], [0], [1], [0, 0, 1, 1], [], []>} : vector<4x8xbf16>, vector<8x288xbf16>, vector<4x288xf32> -> vector<4x288xf32>
    %42 = arith.addf %37, %41 : vector<4x288xf32>
    %c7 = arith.constant 7 : index
    %c0_26 = arith.constant 0 : index
    %c0_27 = arith.constant 0 : index
    %43 = vector.load %arg2[%c7, %c0_26, %c0_27] : memref<9x4x8xbf16, #tpu.memory_space<vmem>>, vector<1x4x8xbf16>
    %44 = vector.shape_cast %43 : vector<1x4x8xbf16> to vector<4x8xbf16>
    %45 = vector.extract_strided_slice %6 {offsets = [0, 37], sizes = [8, 288], strides = [1, 1]} : vector<8x342xbf16> to vector<8x288xbf16>
    %cst_28 = arith.constant dense<0.000000e+00> : vector<4x288xf32>
    %46 = tpu.matmul %44, %45, %cst_28 {dimension_numbers = #tpu.dot_dimension_numbers<[1], [0], [0], [1], [0, 0, 1, 1], [], []>} : vector<4x8xbf16>, vector<8x288xbf16>, vector<4x288xf32> -> vector<4x288xf32>
    %47 = arith.addf %42, %46 : vector<4x288xf32>
    %c8 = arith.constant 8 : index
    %c0_29 = arith.constant 0 : index
    %c0_30 = arith.constant 0 : index
    %48 = vector.load %arg2[%c8, %c0_29, %c0_30] : memref<9x4x8xbf16, #tpu.memory_space<vmem>>, vector<1x4x8xbf16>
    %49 = vector.shape_cast %48 : vector<1x4x8xbf16> to vector<4x8xbf16>
    %50 = vector.extract_strided_slice %6 {offsets = [0, 38], sizes = [8, 288], strides = [1, 1]} : vector<8x342xbf16> to vector<8x288xbf16>
    %cst_31 = arith.constant dense<0.000000e+00> : vector<4x288xf32>
    %51 = tpu.matmul %49, %50, %cst_31 {dimension_numbers = #tpu.dot_dimension_numbers<[1], [0], [0], [1], [0, 0, 1, 1], [], []>} : vector<4x8xbf16>, vector<8x288xbf16>, vector<4x288xf32> -> vector<4x288xf32>
    %52 = arith.addf %47, %51 : vector<4x288xf32>
    %c0_32 = arith.constant 0 : index
    %c0_33 = arith.constant 0 : index
    %53 = vector.load %arg3[%c0_32, %c0_33] : memref<4x1xf32, #tpu.memory_space<vmem>>, vector<4x1xf32>
    %54 = vector.broadcast %53 : vector<4x1xf32> to vector<4x288xf32>
    %55 = arith.addf %52, %54 : vector<4x288xf32>
    %c0_34 = arith.constant 0 : index
    %c0_35 = arith.constant 0 : index
    %c0_36 = arith.constant 0 : index
    %56 = vector.load %arg4[%c0_34, %c0_35, %c0_36] : memref<1x4x288xf32, #tpu.memory_space<vmem>>, vector<1x4x288xf32>
    %57 = vector.shape_cast %56 : vector<1x4x288xf32> to vector<4x288xf32>
    %58 = vector.shape_cast %55 : vector<4x288xf32> to vector<1x4x288xf32>
    tpu.vector_store %arg4[%c0_34, %c0_35, %c0_36], %58 {strides = array<i32>} : memref<1x4x288xf32, #tpu.memory_space<vmem>>, vector<1x4x288xf32>,
    %59 = tpu.iota {dimensions = array<i32: 1>} : vector<4x288xi32>
    %c18_i32 = arith.constant 18 : i32
    %c0_i32 = arith.constant 0 : i32
    %60 = arith.cmpi eq, %c18_i32, %c0_i32 : i32
    %c1_i32 = arith.constant 1 : i32
    %61 = arith.select %60, %c1_i32, %c18_i32 : i32
    %62 = vector.broadcast %61 : i32 to vector<4x288xi32>
    %63 = arith.remsi %59, %62 : vector<4x288xi32>
    %c0_i32_37 = arith.constant 0 : i32
    %64 = vector.broadcast %c0_i32_37 : i32 to vector<4x288xi32>
    %65 = arith.cmpi ne, %63, %64 : vector<4x288xi32>
    %c0_i32_38 = arith.constant 0 : i32
    %66 = vector.broadcast %c0_i32_38 : i32 to vector<4x288xi32>
    %67 = arith.cmpi slt, %63, %66 : vector<4x288xi32>
    %c0_i32_39 = arith.constant 0 : i32
    %68 = arith.cmpi slt, %61, %c0_i32_39 : i32
    %69 = vector.broadcast %68 : i1 to vector<4x288xi1>
    %70 = vector.broadcast %69 : vector<4x288xi1> to vector<4x288xi1>
    %71 = arith.xori %67, %70 : vector<4x288xi1>
    %72 = arith.andi %71, %65 : vector<4x288xi1>
    %73 = vector.broadcast %61 : i32 to vector<4x288xi32>
    %74 = arith.addi %63, %73 : vector<4x288xi32>
    %75 = arith.select %72, %74, %63 : vector<4x288xi1>, vector<4x288xi32>
    %c16_i32 = arith.constant 16 : i32
    %76 = vector.broadcast %c16_i32 : i32 to vector<4x288xi32>
    %77 = arith.cmpi slt, %75, %76 : vector<4x288xi32>
    %cst_40 = arith.constant 0.000000e+00 : f32
    %78 = vector.broadcast %cst_40 : f32 to vector<4x288xf32>
    %79 = arith.select %77, %55, %78 : vector<4x288xi1>, vector<4x288xf32>
    %cst_41 = arith.constant dense<0.000000e+00> : vector<4xf32>
    %80 = vector.multi_reduction <add>, %79, %cst_41 [1] : vector<4x288xf32> to vector<4xf32>
    %81 = vector.shape_cast %80 : vector<4xf32> to vector<4x1xf32>
    %82 = arith.mulf %55, %55 : vector<4x288xf32>
    %cst_42 = arith.constant 0.000000e+00 : f32
    %83 = vector.broadcast %cst_42 : f32 to vector<4x288xf32>
    %84 = arith.select %77, %82, %83 : vector<4x288xi1>, vector<4x288xf32>
    %cst_43 = arith.constant dense<0.000000e+00> : vector<4xf32>
    %85 = vector.multi_reduction <add>, %84, %cst_43 [1] : vector<4x288xf32> to vector<4xf32>
    %86 = vector.shape_cast %85 : vector<4xf32> to vector<4x1xf32>
    %c0_i32_44 = arith.constant 0 : i32
    %87 = arith.cmpi eq, %arg0, %c0_i32_44 : i32
    %88 = arith.extui %87 : i1 to i32
    %c0_i32_45 = arith.constant 0 : i32
    %89 = arith.cmpi ne, %88, %c0_i32_45 : i32
    scf.if %89 {
      %cst_54 = arith.constant 0.000000e+00 : f32
      %96 = vector.broadcast %cst_54 : f32 to vector<4x1xf32>
      %c0_55 = arith.constant 0 : index
      %c0_56 = arith.constant 0 : index
      %97 = vector.load %arg5[%c0_55, %c0_56] : memref<4x1xf32, #tpu.memory_space<vmem>>, vector<4x1xf32>
      tpu.vector_store %arg5[%c0_55, %c0_56], %96 {strides = array<i32>} : memref<4x1xf32, #tpu.memory_space<vmem>>, vector<4x1xf32>,
      %cst_57 = arith.constant 0.000000e+00 : f32
      %98 = vector.broadcast %cst_57 : f32 to vector<4x1xf32>
      %c0_58 = arith.constant 0 : index
      %c0_59 = arith.constant 0 : index
      %99 = vector.load %arg6[%c0_58, %c0_59] : memref<4x1xf32, #tpu.memory_space<vmem>>, vector<4x1xf32>
      tpu.vector_store %arg6[%c0_58, %c0_59], %98 {strides = array<i32>} : memref<4x1xf32, #tpu.memory_space<vmem>>, vector<4x1xf32>,
    } else {
    }
    %c0_46 = arith.constant 0 : index
    %c0_47 = arith.constant 0 : index
    %90 = vector.load %arg5[%c0_46, %c0_47] : memref<4x1xf32, #tpu.memory_space<vmem>>, vector<4x1xf32>
    %91 = arith.addf %90, %81 : vector<4x1xf32>
    %c0_48 = arith.constant 0 : index
    %c0_49 = arith.constant 0 : index
    %92 = vector.load %arg5[%c0_48, %c0_49] : memref<4x1xf32, #tpu.memory_space<vmem>>, vector<4x1xf32>
    tpu.vector_store %arg5[%c0_48, %c0_49], %91 {strides = array<i32>} : memref<4x1xf32, #tpu.memory_space<vmem>>, vector<4x1xf32>,
    %c0_50 = arith.constant 0 : index
    %c0_51 = arith.constant 0 : index
    %93 = vector.load %arg6[%c0_50, %c0_51] : memref<4x1xf32, #tpu.memory_space<vmem>>, vector<4x1xf32>
    %94 = arith.addf %93, %86 : vector<4x1xf32>
    %c0_52 = arith.constant 0 : index
    %c0_53 = arith.constant 0 : index
    %95 = vector.load %arg6[%c0_52, %c0_53] : memref<4x1xf32, #tpu.memory_space<vmem>>, vector<4x1xf32>
    tpu.vector_store %arg6[%c0_52, %c0_53], %94 {strides = array<i32>} : memref<4x1xf32, #tpu.memory_space<vmem>>, vector<4x1xf32>,
    return
  }
  func.func @transform_0(%arg0: i32) -> (i32, i32, i32) {
    %c0_i32 = arith.constant 0 : i32
    %c0_i32_0 = arith.constant 0 : i32
    %c0_i32_1 = arith.constant 0 : i32
    return %arg0, %c0_i32, %c0_i32_0 : i32, i32, i32
  }
  func.func @transform_1(%arg0: i32) -> (i32, i32, i32) {
    %c0_i32 = arith.constant 0 : i32
    %c0_i32_0 = arith.constant 0 : i32
    %c0_i32_1 = arith.constant 0 : i32
    %c0_i32_2 = arith.constant 0 : i32
    return %c0_i32, %c0_i32_0, %c0_i32_1 : i32, i32, i32
  }
  func.func @transform_2(%arg0: i32) -> (i32, i32) {
    %c0_i32 = arith.constant 0 : i32
    %c0_i32_0 = arith.constant 0 : i32
    %c0_i32_1 = arith.constant 0 : i32
    return %c0_i32, %c0_i32_0 : i32, i32
  }
  func.func @transform_3(%arg0: i32) -> (i32, i32, i32) {
    %c0_i32 = arith.constant 0 : i32
    %c0_i32_0 = arith.constant 0 : i32
    %c0_i32_1 = arith.constant 0 : i32
    return %arg0, %c0_i32, %c0_i32_0 : i32, i32, i32
  }
  func.func @transform_4(%arg0: i32) -> (i32, i32) {
    %c0_i32 = arith.constant 0 : i32
    %c0_i32_0 = arith.constant 0 : i32
    %c0_i32_1 = arith.constant 0 : i32
    return %c0_i32, %c0_i32_0 : i32, i32
  }
  func.func @transform_5(%arg0: i32) -> (i32, i32) {
    %c0_i32 = arith.constant 0 : i32
    %c0_i32_0 = arith.constant 0 : i32
    %c0_i32_1 = arith.constant 0 : i32
    return %c0_i32, %c0_i32_0 : i32, i32
  }
}

</mosaic_0001>

<bundles_post_ra>
// kernel: tpu_custom_call.1
= control target key start
LH: loop header
LB: loop body
LE: loop exit
PB: predicated region body
PF: predicated region fallthrough
CT: control target
= control target key end

     0   :  { %11 = vsyncpa [#allocation3], 0  ;;  %s1599_s0 = inlined_call_operand.vmem [shape: bf16[2,8,342], index: 0, kind: input, shape index: {}]   ;;  %s1600_s1 = inlined_call_operand.vmem [shape: bf16[9,4,8], index: 1, kind: input, shape index: {}]   ;;  %s1601_s2 = inlined_call_operand.vmem [shape: f32[4,1], index: 2, kind: input, shape index: {}]   ;;  %s1602_s3 = inlined_call_operand.hbm [shape: f32[2,4,288], index: 3, kind: output, shape index: {0}]   ;;  %s1603_s4 = inlined_call_operand.vmem [shape: f32[4,1], index: 4, kind: output, shape index: {1}]   ;;  %s1604_s5 = inlined_call_operand.vmem [shape: f32[4,1], index: 5, kind: output, shape index: {2}]  }
   0x1   :  { %13 = vsyncpa [#allocation3 + $0x1], 0  ;;  %s1267_s18 = smov 0   ;;  %s1269_s19 = smov 0  }
   0x2   :  { %s1271_s20 = smov 0   ;;  %s1273_s21 = smov 0  }
   0x3 LB: > { %s1288_s22 = sadd.s32 4294967295, %s1225_s21   ;;  %s1066_s23 = sadd.s32 4294967294, %s1225_s21   ;;  %s1225_s21 = sphi %s1273_s21, %s1622_s21   ;;  %s1221_s20 = sphi %s1271_s20, %s1621_s20   ;;  %s1217_s19 = sphi %s1269_s19, %s1620_s19   ;;  %s1213_s18 = sphi %s1267_s18, %s1619_s18  }
   0x4   : > { %s1292_s24 = sadd.s32 1, %s1225_s21   ;;  %s94_s25 = sadd.s32 1, %s1221_s20 }
   0x5   : > { %s91_s26 = ssub.s32 %s1225_s21, %s1292_s24  ;;  %p104_p0 = scmp.ne.s32.totalorder %s1221_s20, %s1217_s19 }
   0x6   : > { %p92_p1 = scmp.eq.s32.totalorder %s91_s26, 0  ;;  %p105_p2 = scmp.eq.s32.totalorder %s1288_s22, 1 }
   0x7   : > { %p110_p3 = scmp.ne.s32.totalorder %s1217_s19, %s1213_s18  ;;  %p111_p4 = scmp.eq.s32.totalorder %s1066_s23, 1 }
   0x8   : > { %s1303_s27 = scalar_select %p92_p1, %s1221_s20, %s94_s25  }
   0x9   : > { %p1305_p5 = por %p105_p2, %p104_p0  ;;  %p1309_p6 = por %p111_p4, %p110_p3 }
   0xa   : > { %p1069_p7 = scmp.ge.s32.totalorder %s1225_s21, 1  ;;  %p185_p8 = scmp.lt.s32.totalorder %s1225_s21, 3 }
   0xc   : > { %p186_p9 = pnand %p1069_p7, %p185_p8 }
   0xd   : > { %p213_p10 = scmp.lt.s32.totalorder (!%p186_p9), %s1288_s22, 1  ;;  %s1227_s10 = smov (!%p186_p9), 127  }
   0xe   : > { %189 = sbr.rel (%p186_p9) target bundleno = 533 (0x215), region = 32  ;;  %s1228_s11 = smov (!%p186_p9), 126  }
   0xf   : > { %s1229_s12 = smov (!%p186_p9), 110   ;;  %s1230_s13 = smov (!%p186_p9), 109  }
  0x10   : > { %s1231_s14 = smov (!%p186_p9), 108   ;;  %s1232_s15 = smov (!%p186_p9), 92  }
  0x11   : > { %s1233_s16 = smov (!%p186_p9), 91   ;;  %s1234_s17 = smov (!%p186_p9), 90  }
  0x12   : > { %p1106_p11 = scmp.ne.s32.totalorder (!%p186_p9), %s1288_s22, 0 }
  0x13   : > { %s214_s30 = scalar_select %p213_p10, %s1288_s22, 1  ;;  %vm260_vm5 = vcmask 1043456   ;;  %vm256_vm6 = vcmask 64512   ;;  %v1334_v19 = vld [vmem:[%s1600_s1] sm:$0x3]  ;;  %vm368_vm7 = vcmask 1031168  }
  0x14   : > { %v1343_v24 = vld [vmem:[%s1600_s1 + $0x4] sm:$0x3]  ;;  %vm253_vm8 = vcmask 1039360   ;;  %v1071_v29 = vld [vmem:[%s1600_s1 + $0x2] sm:$0x3]  ;;  %vm433_vm9 = vcmask 900096  }
  0x15   : > { %s1111_s6 = smul.u32 12, %s214_s30  ;;  %v1082_v49 = vld [vmem:[%s1600_s1 + $0x6] sm:$0x3]  ;;  %vm498_vm10 = vcmask 891904   ;;  %vm563_vm11 = vcmask 883712   ;;  %vm628_vm12 = vcmask 752640  }
  0x16   : > { %v1090_v62 = vld [vmem:[%s1600_s1 + $0xa] sm:$0x3]  ;;  %vm693_vm13 = vcmask 744448   ;;  %vm758_vm14 = vcmask 736256  }
  0x17   : > { %s217_s9 = scalar_lea.vmem %s1599_s0, %s1111_s6  ;;  %s206_s6 = sand.u32 1, %s1217_s19  }
  0x18   : > { %v220_v0 = vld [vmem:[%s217_s9 + $0x8] sm:$0xf]  ;;  %v219_v1 = vld [vmem:[%s217_s9] sm:$0xff]  ;;  %s1110_s7 = smul.u32 12, %s206_s6 }
  0x19   : > { %v223_v2 = vunpack.c.l.bf16 %v220_v0  ;;  %v221_v3 = vunpack.c.l.bf16 %v219_v1  ;;  %v222_v4 = vunpack.c.h.bf16 %v219_v1 }
  0x1a   : > { %s1522_s8 = scalar_lea.vmem [#allocation2], %s1110_s7 }
  0x1b   : > { %vm226_vm0 = vcmp.gt.f32.partialorder %v223_v2, 0.0  ;;  %v229_v5 = vmul.f32 0.20019531, %v223_v2  ;;  %vm224_vm1 = vcmp.gt.f32.partialorder %v221_v3, 0.0  ;;  %vm225_vm2 = vcmp.gt.f32.partialorder %v222_v4, 0.0 }
  0x1c   : > { %vm233_vm3 = vmpackc.low %vm226_vm0, %vm226_vm0  ;;  %v227_v6 = vmul.f32 0.20019531, %v221_v3  ;;  %v228_v7 = vmul.f32 0.20019531, %v222_v4 }
  0x1d   : > { %v231_v8 = vpack.c.bf16 %v229_v5, %v229_v5  ;;  %vm232_vm4 = vmpackc.low %vm225_vm2, %vm224_vm1 }
  0x1e   : > { %v230_v9 = vpack.c.bf16 %v228_v7, %v227_v6 }
  0x1f   : > { %v235_v10 = vsel %vm233_vm3, %v220_v0, %v231_v8 }
  0x20   : > { %v243_v11 = vunpack.c.l.b16 %v235_v10  ;;  %v234_v12 = vsel %vm232_vm4, %v219_v1, %v230_v9 }
  0x21   : > { %v242_v13 = vunpack.c.h.b16 %v234_v12  ;;  %v241_v16 = vunpack.c.l.b16 %v234_v12  ;;  %v1086_v12 = vld [vmem:[%s1600_s1 + $0x8] sm:$0x3] }
  0x22   : > { %v246_v14 = vpack.c.b16 %v243_v11, %v243_v11 }
  0x23   : > { %v1320_v15 = vpack.c.b16 %v242_v13, %v242_v13  ;;  %v244_v17 = vpack.c.b16 %v241_v16, %v241_v16 }
  0x24   : > { %251 = vrot.lane.b32.xlu0 %v246_v14, %s1227_s10  ;;  %v319_v30 = vsel %vm260_vm5, %v246_v14, 0 }
  0x25   : > { %249 = vrot.lane.b32.xlu1 %v1320_v15, %s1227_s10  ;;  %364 = vrot.lane.b32.xlu2 %v1320_v15, %s1228_s11  ;;  %v313_v18 = vsel %vm260_vm5, %v244_v17, 0  ;;  %v316_v35 = vsel %vm260_vm5, %v1320_v15, 0 }
  0x26   : > { %328 = vmatpush.bf16.msra.mxu3 %v313_v18  ;;  %v1094_v18 = vld [vmem:[%s1600_s1 + $0xc] sm:$0x3] }
  0x29   : > { %1075 = vmatmul.msk.bf16.vlgmr.msra.gmra.mxu3 %vm256_vm6, %v1334_v19 }
  0x2c   : > { %247 = vrot.lane.b32.xlu0 %v244_v17, %s1227_s10 }
  0x2d   : > { %362 = vrot.lane.b32.xlu1 %v244_v17, %s1228_s11  ;;  %366 = vrot.lane.b32.xlu2 %v246_v14, %s1228_s11 }
  0x34   : > { %429 = vrot.lane.b32.xlu0 %v1320_v15, %s1229_s12 }
  0x35   : > { %431 = vrot.lane.b32.xlu1 %v246_v14, %s1229_s12  ;;  %427 = vrot.lane.b32.xlu2 %v244_v17, %s1229_s12 }
  0x3c   : > { %496 = vrot.lane.b32.xlu0 %v246_v14, %s1230_s13 }
  0x3d   : > { %492 = vrot.lane.b32.xlu1 %v244_v17, %s1230_s13  ;;  %494 = vrot.lane.b32.xlu2 %v1320_v15, %s1230_s13 }
  0x44   : > { %557 = vrot.lane.b32.xlu0 %v244_v17, %s1231_s14 }
  0x45   : > { %559 = vrot.lane.b32.xlu1 %v1320_v15, %s1231_s14  ;;  %622 = vrot.lane.b32.xlu2 %v244_v17, %s1232_s15 }
  0x4c   : > { %624 = vrot.lane.b32.xlu0 %v1320_v15, %s1232_s15 }
  0x4d   : > { %561 = vrot.lane.b32.xlu1 %v246_v14, %s1231_s14  ;;  %626 = vrot.lane.b32.xlu2 %v246_v14, %s1232_s15 }
  0x54   : > { %689 = vrot.lane.b32.xlu0 %v1320_v15, %s1233_s16 }
  0x55   : > { %691 = vrot.lane.b32.xlu1 %v246_v14, %s1233_s16  ;;  %687 = vrot.lane.b32.xlu2 %v244_v17, %s1233_s16 }
  0x5c   : > { %756 = vrot.lane.b32.xlu0 %v246_v14, %s1234_s17 }
  0x5d   : > { %752 = vrot.lane.b32.xlu1 %v244_v17, %s1234_s17  ;;  %754 = vrot.lane.b32.xlu2 %v1320_v15, %s1234_s17 }
  0x7f   : > { %v365_v20 = vpop.permute.xlu2 %364 }
  0x87   : > { %v367_v21 = vpop.permute.xlu2 %366 }
  0x88   : > { %v370_v22 = vsel %vm368_vm7, %v365_v20, %v367_v21  ;;  %v381_v39 = vsel %vm260_vm5, %v367_v21, 0 }
  0x89   : > { %v378_v23 = vsel %vm260_vm5, %v370_v22, 0 }
  0x8a   : > { %403 = vmatpush.bf16.msrb.mxu3 %v378_v23 }
  0x8d   : > { %1080 = vmatmul.msk.bf16.vlgmr.msrb.gmra.mxu3 %vm256_vm6, %v1343_v24 }
  0x8f   : > { %v428_v40 = vpop.permute.xlu2 %427 }
  0x96   : > { %v252_v25 = vpop.permute.xlu0 %251 }
  0x97   : > { %v250_v26 = vpop.permute.xlu1 %249  ;;  %v268_v27 = vsel %vm260_vm5, %v252_v25, 0  ;;  %v495_v48 = vpop.permute.xlu2 %494 }
  0x98   : > { %303 = vmatpush.bf16.msra.mxu2 %v268_v27  ;;  %v255_v28 = vsel %vm253_vm8, %v250_v26, %v252_v25  ;;  %v1098_v25 = vld [vmem:[%s1600_s1 + $0xe] sm:$0x3] }
  0x99   : > { %v265_v31 = vsel %vm260_vm5, %v255_v28, 0 }
  0x9a   : > { %290 = vmatpush.bf16.msra.mxu1 %v265_v31  ;;  %v1102_v31 = vld [vmem:[%s1600_s1 + $0x10] sm:$0x3] }
  0x9b   : > { %1074 = vmatmul.msk.bf16.vlgmr.msra.gmra.mxu2 %vm256_vm6, %v1071_v29 }
  0x9d   : > { %1073 = vmatmul.msk.bf16.vlgmr.msra.gmra.mxu1 %vm256_vm6, %v1071_v29 }
  0x9e   : > { %354 = vmatpush.bf16.msrb.mxu1 %v319_v30  ;;  %v248_v32 = vpop.permute.xlu0 %247  ;;  %v1235_v30 = vmov 0  }
  0x9f   : > { %v363_v33 = vpop.permute.xlu1 %362  ;;  %v254_v34 = vsel %vm253_vm8, %v248_v32, %v250_v26  ;;  %v623_v57 = vpop.permute.xlu2 %622  ;;  %1162 = vset.pattern.permute.xlu0 %v1235_v30 }
  0xa0   : > { %v262_v36 = vsel %vm260_vm5, %v254_v34, 0  ;;  %v369_v37 = vsel %vm368_vm7, %v363_v33, %v365_v20 }
  0xa1   : > { %277 = vmatpush.bf16.msra.mxu0 %v262_v36  ;;  %v375_v38 = vsel %vm260_vm5, %v369_v37, 0 }
  0xa2   : > { %390 = vmatpush.bf16.msrb.mxu2 %v375_v38 }
  0xa4   : > { %1072 = vmatmul.msk.bf16.vlgmr.msra.gmra.mxu0 %vm256_vm6, %v1071_v29  ;;  %v815_v29 = vld [vmem:[%s1601_s2] sm:$0xf] }
  0xa5   : > { %341 = vmatpush.bf16.msrb.mxu0 %v316_v35  ;;  %818 = vperm.xlu0 %1162, %v815_v29  }
  0xa6   : > { %v430_v41 = vpop.permute.xlu0 %429 }
  0xa7   : > { %v432_v42 = vpop.permute.xlu1 %431  ;;  %v434_v43 = vsel %vm433_vm9, %v428_v40, %v430_v41  ;;  %v627_v63 = vpop.permute.xlu2 %626 }
  0xa8   : > { %v446_v44 = vsel %vm260_vm5, %v432_v42, 0  ;;  %v435_v45 = vsel %vm433_vm9, %v430_v41, %v432_v42  ;;  %v440_v46 = vsel %vm260_vm5, %v434_v43, 0 }
  0xa9   : > { %416 = vmatpush.bf16.msra.mxu0 %v381_v39  ;;  %v443_v47 = vsel %vm260_vm5, %v435_v45, 0  ;;  %481 = vmatpush.bf16.msra.mxu3 %v446_v44 }
  0xaa   : > { %455 = vmatpush.bf16.msra.mxu1 %v440_v46  ;;  %468 = vmatpush.bf16.msra.mxu2 %v443_v47 }
  0xab   : > { %1079 = vmatmul.msk.bf16.vlgmr.msrb.gmra.mxu2 %vm256_vm6, %v1343_v24 }
  0xac   : > { %1085 = vmatmul.msk.bf16.vlgmr.msra.gmra.mxu3 %vm256_vm6, %v1082_v49  ;;  %v330_v32 = vpop.f32.mrf.mxu3 }
  0xad   : > { %1077 = vmatmul.msk.bf16.vlgmr.msrb.gmra.mxu1 %vm256_vm6, %v1334_v19 }
  0xae   : > { %v497_v50 = vpop.permute.xlu0 %496 }
  0xaf   : > { %v493_v51 = vpop.permute.xlu1 %492  ;;  %v500_v52 = vsel %vm498_vm10, %v495_v48, %v497_v50  ;;  %v511_v53 = vsel %vm260_vm5, %v497_v50, 0  ;;  %v688_v9 = vpop.permute.xlu2 %687 }
  0xb0   : > { %v499_v54 = vsel %vm498_vm10, %v493_v51, %v495_v48  ;;  %v508_v55 = vsel %vm260_vm5, %v500_v52, 0  ;;  %546 = vmatpush.bf16.msrb.mxu2 %v511_v53 }
  0xb1   : > { %533 = vmatpush.bf16.msrb.mxu1 %v508_v55  ;;  %v505_v56 = vsel %vm260_vm5, %v499_v54, 0 }
  0xb4   : > { %1076 = vmatmul.msk.bf16.vlgmr.msrb.gmra.mxu0 %vm256_vm6, %v1334_v19  ;;  %v641_v19 = vsel %vm260_vm5, %v627_v63, 0  ;;  %v332_v33 = vpop.f32.mrf.mxu3 }
  0xb5   : > { %520 = vmatpush.bf16.msrb.mxu0 %v505_v56 }
  0xb6   : > { %v558_v58 = vpop.permute.xlu0 %557 }
  0xb7   : > { %v560_v59 = vpop.permute.xlu1 %559  ;;  %v755_v20 = vpop.permute.xlu2 %754 }
  0xb8   : > { %v564_v60 = vsel %vm563_vm11, %v558_v58, %v560_v59 }
  0xb9   : > { %v570_v61 = vsel %vm260_vm5, %v564_v60, 0 }
  0xba   : > { %585 = vmatpush.bf16.msrb.mxu3 %v570_v61 }
  0xbb   : > { %1084 = vmatmul.msk.bf16.vlgmr.msra.gmra.mxu2 %vm256_vm6, %v1082_v49 }
  0xbd   : > { %1083 = vmatmul.msk.bf16.vlgmr.msra.gmra.mxu1 %vm256_vm6, %v1082_v49  ;;  %1091 = vmatmul.msk.bf16.vlgmr.msrb.gmra.mxu3 %vm256_vm6, %v1090_v62 }
  0xbe   : > { %v625_v0 = vpop.permute.xlu0 %624 }
  0xbf   : > { %v562_v1 = vpop.permute.xlu1 %561  ;;  %v629_v2 = vsel %vm628_vm12, %v623_v57, %v625_v0  ;;  %v630_v3 = vsel %vm628_vm12, %v625_v0, %v627_v63  ;;  %v832_v57 = vlaneseq }
  0xc0   : > { %v565_v4 = vsel %vm563_vm11, %v560_v59, %v562_v1  ;;  %v576_v5 = vsel %vm260_vm5, %v562_v1, 0  ;;  %v635_v6 = vsel %vm260_vm5, %v629_v2, 0  ;;  %v638_v7 = vsel %vm260_vm5, %v630_v3, 0 }
  0xc1   : > { %650 = vmatpush.bf16.msra.mxu2 %v635_v6  ;;  %663 = vmatpush.bf16.msra.mxu3 %v638_v7  ;;  %v573_v8 = vsel %vm260_vm5, %v565_v4, 0 }
  0xc2   : > { %611 = vmatpush.bf16.msra.mxu1 %v576_v5 }
  0xc4   : > { %1081 = vmatmul.msk.bf16.vlgmr.msra.gmra.mxu0 %vm256_vm6, %v1343_v24 }
  0xc5   : > { %598 = vmatpush.bf16.msra.mxu0 %v573_v8 }
  0xc6   : > { %v690_v10 = vpop.permute.xlu0 %689 }
  0xc7   : > { %v692_v11 = vpop.permute.xlu1 %691  ;;  %v694_v14 = vsel %vm693_vm13, %v688_v9, %v690_v10 }
  0xc8   : > { %v706_v13 = vsel %vm260_vm5, %v692_v11, 0  ;;  %v695_v15 = vsel %vm693_vm13, %v690_v10, %v692_v11  ;;  %v700_v17 = vsel %vm260_vm5, %v694_v14, 0 }
  0xc9   : > { %v703_v16 = vsel %vm260_vm5, %v695_v15, 0  ;;  %741 = vmatpush.bf16.msrb.mxu3 %v706_v13 }
  0xcb   : > { %1089 = vmatmul.msk.bf16.vlgmr.msrb.gmra.mxu2 %vm256_vm6, %v1086_v12 }
  0xcc   : > { %728 = vmatpush.bf16.msrb.mxu2 %v703_v16 }
  0xcd   : > { %1088 = vmatmul.msk.bf16.vlgmr.msrb.gmra.mxu1 %vm256_vm6, %v1086_v12  ;;  %1096 = vmatmul.msk.bf16.vlgmr.msra.gmra.mxu3 %vm256_vm6, %v1094_v18 }
  0xce   : > { %715 = vmatpush.bf16.msrb.mxu1 %v700_v17  ;;  %v757_v21 = vpop.permute.xlu0 %756 }
  0xcf   : > { %v760_v22 = vsel %vm758_vm14, %v755_v20, %v757_v21  ;;  %v771_v23 = vsel %vm260_vm5, %v757_v21, 0  ;;  %v753_v26 = vpop.permute.xlu1 %752 }
  0xd0   : > { %v768_v24 = vsel %vm260_vm5, %v760_v22, 0  ;;  %v759_v27 = vsel %vm758_vm14, %v753_v26, %v755_v20 }
  0xd1   : > { %v765_v28 = vsel %vm260_vm5, %v759_v27, 0 }
  0xd4   : > { %1087 = vmatmul.msk.bf16.vlgmr.msrb.gmra.mxu0 %vm256_vm6, %v1086_v12 }
  0xd5   : > { %676 = vmatpush.bf16.msrb.mxu0 %v641_v19 }
  0xdb   : > { %1095 = vmatmul.msk.bf16.vlgmr.msra.gmra.mxu2 %vm256_vm6, %v1094_v18 }
  0xdc   : > { %806 = vmatpush.bf16.msra.mxu2 %v771_v23 }
  0xdd   : > { %1093 = vmatmul.msk.bf16.vlgmr.msra.gmra.mxu1 %vm256_vm6, %v1090_v62  ;;  %1101 = vmatmul.msk.bf16.vlgmr.msrb.gmra.mxu3 %vm256_vm6, %v1098_v25 }
  0xde   : > { %793 = vmatpush.bf16.msra.mxu1 %v768_v24 }
  0xe4   : > { %1092 = vmatmul.msk.bf16.vlgmr.msra.gmra.mxu0 %vm256_vm6, %v1090_v62  ;;  %v1440_v62 = vand.u32 127, %v832_v57 }
  0xe5   : > { %780 = vmatpush.bf16.msra.mxu0 %v765_v28 }
  0xe6   : > { %v1445_v1 = vadd.s32 128, %v1440_v62  ;;  %v1448_v3 = vadd.s32 256, %v1440_v62  ;;  %v839_v8 = vand.u32 65535, %v1440_v62  ;;  %v840_v12 = vshrl.u32 %v1440_v62, 16 }
  0xe8   : > { %v868_v6 = vand.u32 65535, %v1445_v1  ;;  %v897_v7 = vand.u32 65535, %v1448_v3  ;;  %v869_v10 = vshrl.u32 %v1445_v1, 16  ;;  %v843_v13 = vmul.u32 58254, %v839_v8 }
  0xe9   : > { %v898_v15 = vshrl.u32 %v1448_v3, 16  ;;  %v842_v22 = vmul.u32 14564, %v839_v8  ;;  %v844_v23 = vmul.u32 14564, %v840_v12 }
  0xea   : > { %v872_v11 = vmul.u32 58254, %v868_v6  ;;  %v901_v16 = vmul.u32 58254, %v897_v7  ;;  %v871_v19 = vmul.u32 14564, %v868_v6  ;;  %v873_v20 = vmul.u32 14564, %v869_v10 }
  0xeb   : > { %1100 = vmatmul.msk.bf16.vlgmr.msrb.gmra.mxu2 %vm256_vm6, %v1098_v25  ;;  %v846_v24 = vshll.u32 %v843_v13, 16  ;;  %v902_v26 = vmul.u32 14564, %v898_v15 }
  0xec   : > { %v875_v21 = vshll.u32 %v872_v11, 16  ;;  %v904_v27 = vshll.u32 %v901_v16, 16  ;;  %v877_v29 = vshll.u32 %v873_v20, 16  ;;  %v876_v57 = vshrl.u32 %v872_v11, 16 }
  0xed   : > { %1099 = vmatmul.msk.bf16.vlgmr.msrb.gmra.mxu1 %vm256_vm6, %v1098_v25  ;;  %v900_v25 = vmul.u32 14564, %v897_v7  ;;  %vm850_vm0 = vc.u32 %v842_v22, %v846_v24  ;;  %v852_v33 = vadd.s32 %v846_v24, %v842_v22  ;;  %v878_v7 = vshrl.u32 %v873_v20, 16 }
  0xee   : > { %vm879_vm15 = vc.u32 %v871_v19, %v875_v21 }
  0xef   : > { %vm908_vm1 = vc.u32 %v900_v25, %v904_v27 }
  0xf4   : > { %1097 = vmatmul.msk.bf16.vlgmr.msrb.gmra.mxu0 %vm256_vm6, %v1094_v18 }
  0xfb   : > { %1105 = vmatmul.msk.bf16.vlgmr.msra.gmra.mxu2 %vm256_vm6, %v1102_v31 }
  0xfd   : > { %1104 = vmatmul.msk.bf16.vlgmr.msra.gmra.mxu1 %vm256_vm6, %v1102_v31 }
 0x104   : > { %1103 = vmatmul.msk.bf16.vlgmr.msra.gmra.mxu0 %vm256_vm6, %v1102_v31  ;;  %v881_v31 = vadd.s32 %v875_v21, %v871_v19 }
 0x106   : > { %vm883_vm2 = vc.u32 %v881_v31, %v877_v29 }
 0x110   : > { %v405_v34 = vpop.f32.mrf.mxu3 }
 0x118   : > { %v407_v36 = vpop.f32.mrf.mxu3 }
 0x119   : > { %v906_v36 = vshll.u32 %v902_v26, 16 }
 0x11a   : > { %v292_v35 = vpop.f32.mrf.mxu1 }
 0x11e   : > { %v305_v37 = vpop.f32.mrf.mxu2 }
 0x121   : > { %v279_v38 = vpop.f32.mrf.mxu0 }
 0x122   : > { %v294_v39 = vpop.f32.mrf.mxu1  ;;  %v331_v40 = vadd.f32 %v330_v32, %v279_v38  ;;  %v848_v32 = vshll.u32 %v844_v23, 16 }
 0x123   : > { %v845_v39 = vmul.u32 58254, %v840_v12 }
 0x124   : > { %vm854_vm3 = vc.u32 %v852_v33, %v848_v32 }
 0x126   : > { %v307_v41 = vpop.f32.mrf.mxu2 }
 0x129   : > { %v281_v42 = vpop.f32.mrf.mxu0 }
 0x12a   : > { %v356_v43 = vpop.f32.mrf.mxu1  ;;  %v851_v42 = vsel %vm850_vm0, 1, %v1235_v30 }
 0x12b   : > { %v357_v44 = vadd.f32 %v356_v43, %v305_v37  ;;  %v910_v37 = vadd.s32 %v904_v27, %v900_v25  ;;  %v903_v43 = vmul.u32 58254, %v898_v15 }
 0x12d   : > { %vm912_vm4 = vc.u32 %v910_v37, %v906_v36 }
 0x12e   : > { %v392_v45 = vpop.f32.mrf.mxu2 }
 0x12f   : > { %v1430_v46 = vadd.f32 %v392_v45, %v331_v40  ;;  %v483_v47 = vpop.f32.mrf.mxu3  ;;  %v880_v40 = vsel %vm879_vm15, 1, %v1235_v30  ;;  %vm830_vm15 = vcmask 257024  }
 0x131   : > { %v343_v48 = vpop.f32.mrf.mxu0 }
 0x132   : > { %v344_v49 = vadd.f32 %v343_v48, %v292_v35  ;;  %v358_v50 = vpop.f32.mrf.mxu1  ;;  %v874_v35 = vmul.u32 58254, %v869_v10  ;;  %v884_v48 = vsel %vm883_vm2, 1, %v1235_v30  ;;  %v849_v10 = vshrl.u32 %v844_v23, 16 }
 0x133   : > { %v855_v50 = vsel %vm854_vm3, 1, %v1235_v30 }
 0x134   : > { %v1432_v51 = vadd.f32 %v405_v34, %v344_v49  ;;  %v882_v45 = vadd.s32 %v880_v40, %v874_v35 }
 0x136   : > { %v394_v52 = vpop.f32.mrf.mxu2 }
 0x137   : > { %v485_v53 = vpop.f32.mrf.mxu3 }
 0x138   : > { %v913_v53 = vsel %vm912_vm4, 1, %v1235_v30 }
 0x139   : > { %v345_v54 = vpop.f32.mrf.mxu0 }
 0x13a   : > { %v1434_v55 = vpop.f32.mrf.mxu1 }
 0x13e   : > { %v1436_v56 = vpop.f32.mrf.mxu2 }
 0x140   : > { %v1438_v58 = vpop.f32.mrf.mxu3 }
 0x141   : > { %v418_v59 = vpop.f32.mrf.mxu0 }
 0x142   : > { %v424_v60 = vadd.f32 %v418_v59, %v357_v44  ;;  %v459_v61 = vpop.f32.mrf.mxu1  ;;  %v909_v44 = vsel %vm908_vm1, 1, %v1235_v30  ;;  %v886_v59 = vadd.s32 %v884_v48, %v882_v45 }
 0x143   : > { %v911_v52 = vadd.s32 %v909_v44, %v903_v43  ;;  %v847_v61 = vshrl.u32 %v843_v13, 16 }
 0x144   : > { %v1442_v63 = vadd.f32 %v483_v47, %v424_v60  ;;  %v853_v47 = vadd.s32 %v851_v42, %v845_v39  ;;  %v887_v8 = vadd.s32 %v886_v59, %v876_v57 }
 0x145   : > { %v915_v6 = vadd.s32 %v913_v53, %v911_v52 }
 0x146   : > { %v472_v0 = vpop.f32.mrf.mxu2  ;;  %v888_v22 = vadd.s32 %v887_v8, %v878_v7 }
 0x147   : > { %v857_v0 = vadd.s32 %v855_v50, %v853_v47 }
 0x148   : > { %v589_v2 = vpop.f32.mrf.mxu3  ;;  %v889_v27 = vshrl.u32 %v888_v22, 4 }
 0x149   : > { %v420_v4 = vpop.f32.mrf.mxu0  ;;  %v858_v12 = vadd.s32 %v857_v0, %v847_v61 }
 0x14a   : > { %v1450_v5 = vpop.f32.mrf.mxu1  ;;  %v905_v4 = vshrl.u32 %v901_v16, 16  ;;  %v488_v16 = vadd.f32 %v1436_v56, %v1432_v51  ;;  %v890_v20 = vmul.u32 18, %v889_v27 }
 0x14b   : > { %v859_v24 = vadd.s32 %v858_v12, %v849_v10 }
 0x14c   : > { %v916_v19 = vadd.s32 %v915_v6, %v905_v4  ;;  %v553_v23 = vadd.f32 %v1450_v5, %v488_v16  ;;  %v891_v35 = vsub.s32 %v1445_v1, %v890_v20 }
 0x14e   : > { %v1455_v9 = vpop.f32.mrf.mxu2  ;;  %vm924_vm6 = vcmp.ne.s32.totalorder %v891_v35, 0  ;;  %vm927_vm7 = vcmp.lt.s32.totalorder %v891_v35, 0 }
 0x14f   : > { %v554_v36 = vadd.f32 %v1455_v9, %v1442_v63  ;;  %v819_v63 = vpop.permute.xlu0 %818  ;;  %vm1487_vm12 = vmand %vm927_vm7, %vm924_vm6 }
 0x150   : > { %v1459_v14 = vpop.f32.mrf.mxu3 }
 0x151   : > { %v1462_v17 = vpop.f32.mrf.mxu0 }
 0x152   : > { %v537_v18 = vpop.f32.mrf.mxu1 }
 0x153   : > { %v907_v18 = vshrl.u32 %v902_v26, 16 }
 0x155   : > { %v917_v11 = vadd.s32 %v916_v19, %v907_v18 }
 0x156   : > { %v550_v28 = vpop.f32.mrf.mxu2 }
 0x157   : > { %v860_v28 = vshrl.u32 %v859_v24, 4  ;;  %v918_v29 = vshrl.u32 %v917_v11, 4 }
 0x158   : > { %v667_v34 = vpop.f32.mrf.mxu3 }
 0x159   : > { %v524_v38 = vpop.f32.mrf.mxu0  ;;  %v861_v32 = vmul.u32 18, %v860_v28  ;;  %v919_v33 = vmul.u32 18, %v918_v29 }
 0x15a   : > { %v613_v41 = vpop.f32.mrf.mxu1  ;;  %v487_v38 = vadd.f32 %v1434_v55, %v1430_v46  ;;  %v933_v46 = vadd.s32 18, %v891_v35 }
 0x15b   : > { %v862_v37 = vsub.s32 %v1440_v62, %v861_v32  ;;  %v920_v56 = vsub.s32 %v1448_v3, %v919_v33  ;;  %v619_v5 = vadd.f32 %v613_v41, %v554_v36 }
 0x15c   : > { %v552_v40 = vadd.f32 %v1462_v17, %v487_v38 }
 0x15d   : > { %vm923_vm8 = vcmp.ne.s32.totalorder %v862_v37, 0  ;;  %vm926_vm9 = vcmp.lt.s32.totalorder %v862_v37, 0  ;;  %vm925_vm10 = vcmp.ne.s32.totalorder %v920_v56, 0  ;;  %vm928_vm11 = vcmp.lt.s32.totalorder %v920_v56, 0 }
 0x15e   : > { %v1468_v49 = vpop.f32.mrf.mxu2  ;;  %v617_v9 = vadd.f32 %v1438_v58, %v552_v40  ;;  %vm1494_vm13 = vmand %vm926_vm9, %vm923_vm8  ;;  %v932_v17 = vadd.s32 18, %v862_v37  ;;  %v934_v41 = vadd.s32 18, %v920_v56  ;;  %v936_v58 = vsel %vm1487_vm12, %v933_v46, %v891_v35 }
 0x15f   : > { %vm1499_vm14 = vmand %vm928_vm11, %vm925_vm10  ;;  %vm1510_vm0 = vcmp.lt.s32.totalorder %v936_v58, 16 }
 0x160   : > { %v1472_v54 = vpop.f32.mrf.mxu3  ;;  %v682_v48 = vadd.f32 %v1468_v49, %v617_v9  ;;  %v935_v57 = vsel %vm1494_vm13, %v932_v17, %v862_v37 }
 0x161   : > { %v600_v60 = vpop.f32.mrf.mxu0  ;;  %vm1514_vm1 = vcmp.lt.s32.totalorder %v935_v57, 16 }
 0x162   : > { %v615_v2 = vpop.f32.mrf.mxu1  ;;  %v618_v34 = vadd.f32 %v600_v60, %v553_v23 }
 0x164   : > { %v683_v39 = vadd.f32 %v1459_v14, %v618_v34 }
 0x166   : > { %v654_v15 = vpop.f32.mrf.mxu2 }
 0x168   : > { %v745_v21 = vpop.f32.mrf.mxu3 }
 0x169   : > { %v602_v30 = vpop.f32.mrf.mxu0 }
 0x16a   : > { %v717_v25 = vpop.f32.mrf.mxu1 }
 0x16b   : > { %v747_v53 = vadd.f32 %v717_v25, %v682_v48 }
 0x16e   : > { %v730_v13 = vpop.f32.mrf.mxu2 }
 0x16f   : > { %v748_v1 = vadd.f32 %v730_v13, %v683_v39 }
 0x171   : > { %v678_v31 = vpop.f32.mrf.mxu0 }
 0x172   : > { %v719_v26 = vpop.f32.mrf.mxu1  ;;  %v684_v42 = vadd.f32 %v678_v31, %v619_v5 }
 0x174   : > { %v749_v44 = vadd.f32 %v1472_v54, %v684_v42  ;;  %v937_v54 = vsel %vm1499_vm14, %v934_v41, %v920_v56 }
 0x175   : > { %vm1518_vm2 = vcmp.lt.s32.totalorder %v937_v54, 16 }
 0x176   : > { %v732_v51 = vpop.f32.mrf.mxu2 }
 0x179   : > { %v680_v43 = vpop.f32.mrf.mxu0 }
 0x17a   : > { %v795_v62 = vpop.f32.mrf.mxu1 }
 0x17b   : > { %v813_v55 = vadd.f32 %v795_v62, %v748_v1 }
 0x17d   : > { %v822_v45 = vadd.f32 %v819_v63, %v813_v55 }
 0x17e   : > { %v808_v50 = vpop.f32.mrf.mxu2 }
 0x17f   : > { %v814_v52 = vadd.f32 %v808_v50, %v749_v44  ;;  %v952_v59 = vmul.f32 %v822_v45, %v822_v45  ;;  %v826_v7 = vrot.slane %v822_v45, 4  ;;  %v942_v10 = vsel %vm1510_vm0, %v822_v45, 0.0 }
 0x180   : > { %v945_v25 = vsel %vm260_vm5, %v942_v10, 0.0 }
 0x181   : > { %v823_v60 = vadd.f32 %v819_v63, %v814_v52  ;;  %v782_v61 = vpop.f32.mrf.mxu0  ;;  %v955_v15 = vsel %vm1510_vm0, %v952_v59, 0.0 }
 0x182   : > { %v812_v49 = vadd.f32 %v782_v61, %v747_v53  ;;  %v797_v2 = vpop.f32.mrf.mxu1  ;;  %v958_v20 = vsel %vm260_vm5, %v955_v15, 0.0 }
 0x183   : > { %831 = vst.msk [vmem:[%s1522_s8 + $0x8] sm:$0xf] %vm830_vm15, %v823_v60  ;;  %v953_v12 = vmul.f32 %v823_v60, %v823_v60  ;;  %v943_v30 = vsel %vm1518_vm2, %v823_v60, 0.0 }
 0x184   : > { %v821_v8 = vadd.f32 %v819_v63, %v812_v49  ;;  %v947_v29 = vsel %vm830_vm15, %v943_v30, 0.0 }
 0x185   : > { %v956_v28 = vsel %vm1518_vm2, %v953_v12, 0.0 }
 0x186   : > { %v827_v18 = vsel %vm260_vm5, %v821_v8, %v826_v7  ;;  %v951_v19 = vmul.f32 %v821_v8, %v821_v8  ;;  %v810_v21 = vpop.f32.mrf.mxu2  ;;  %v941_v22 = vsel %vm1514_vm1, %v821_v8, 0.0  ;;  %v960_v32 = vsel %vm830_vm15, %v956_v28, 0.0 }
 0x187   : > { %829 = vst [vmem:[%s1522_s8] sm:$0xff] %v827_v18  ;;  %v944_v24 = vsel %vm260_vm5, %v941_v22, 0.0 }
 0x188   : > { %v946_v11 = vadd.f32 %v945_v25, %v944_v24  ;;  %v954_v27 = vsel %vm1514_vm1, %v951_v19, 0.0 }
 0x189   : > { %v784_v13 = vpop.f32.mrf.mxu0  ;;  %v957_v16 = vsel %vm260_vm5, %v954_v27, 0.0 }
 0x18a   : > { %v948_v23 = vadd.f32 %v947_v29, %v946_v11  ;;  %v959_v31 = vadd.f32 %v958_v20, %v957_v16 }
 0x18c   : > { %949 = vadd.xlane.f32.xlu1 %v948_v23  ;;  %v961_v26 = vadd.f32 %v960_v32, %v959_v31 }
 0x18e   : > { %962 = vadd.xlane.f32.xlu2 %v961_v26 }
 0x1fd   : > { %967 = sbr.rel (%p1106_p11) target bundleno = 517 (0x205), region = 36 }
 0x1ff   : > { %v950_v33 = vpop.xlane.xlu1 %949 }
 0x201   : > { %v963_v34 = vpop.xlane.xlu2 %962 }
 0x202   : > { %vm968_vm3 = vcmask 3072   ;;  %v1236_v35 = vmov 0.0  }
 0x203   : > { %969 = vst.msk [vmem:[%s1603_s4] sm:$0xf] %vm968_vm3, %v1236_v35 }
 0x204   : > { %970 = vst.msk [vmem:[%s1604_s5] sm:$0xf] %vm968_vm3, %v1236_v35 }
 0x205 PF: > { %vm973_vm5 = vcmask 3072   ;;  %s1112_s17 = smul.u32 12, %s1288_s22  ;;  %s992_s23 = sshll.u32 %s1522_s8, 4  ;;  %s993_s23 = int_to_ptr.vmem [resolvable:$true] %s992_s23 }
 0x206   : > { %s979_s13 = scalar_lea.sflag [#allocation3], %s206_s6  ;;  %s1183_s16 = scalar_lea.hbm %s1602_s3, 24 }
 0x207   : > { %s990_s9 = scalar_lea.hbm %s1602_s3, %s1112_s17 }
 0x208   : > { %s994_s12 = sshll.u32 %s990_s9, 4  ;;  %s995_s12 = int_to_ptr.hbm [resolvable:$true] %s994_s12 }
 0x209   : > { %s1177_s14 = sshra.s32 %s995_s12, 4  ;;  %s1178_s14 = int_to_ptr.hbm [resolvable:$true] %s1177_s14 }
 0x20a   : > { %v971_v36 = vld [vmem:[%s1603_s4] sm:$0xf]  ;;  %s1179_s22 = scalar_lea.hbm %s1178_s14, 12  ;;  %p1184_p1 = scmp.lt.s32.totalorder %s1178_s14, %s1602_s3 }
 0x20b   : > { %v975_v37 = vld [vmem:[%s1604_s5] sm:$0xf]  ;;  %v972_v38 = vadd.f32 %v971_v36, %v950_v33  ;;  %p1180_p12 = scmp.ne.s32.totalorder %s1178_s14, %s1179_s22  ;;  %p1185_p2 = scmp.lt.s32.totalorder %s1183_s16, %s1179_s22 }
 0x20c   : > { %v976_v51 = vadd.f32 %v975_v37, %v963_v34 }
 0x20d   : > { %974 = vst.msk [vmem:[%s1603_s4] sm:$0xf] %vm973_vm5, %v972_v38  ;;  %p1181_p13 = pnand %p1180_p12, %p1305_p5  ;;  %p1186_p3 = por %p1185_p2, %p1184_p1 }
 0x20e   : > { %977 = vst.msk [vmem:[%s1604_s5] sm:$0xf] %vm973_vm5, %v976_v51 }
 0x20f   : > { %p1182_p0 = pneg %p1181_p13 }
 0x211   : > { %p1187_p4 = pnand %p1186_p3, %p1182_p0 }
 0x213   : > { %1190 = shalt.err (!%p1187_p4)
}
 0x214   : > { %1113 = dma.vmem_to_hbm [thread:$0]  (%p1305_p5), %s993_s23, 192, %s995_s12, %s979_s13  }
 0x215 PF: > { %p1119_p7 = scmp.ge.s32.totalorder %s1225_s21, 2  ;;  %s1018_s6 = sand.u32 1, %s1213_s18  }
 0x216   : > { %s1019_s26 = scalar_lea.sflag [#allocation3], %s1018_s6 }
 0x217   : > { %p1116_p8 = pnand %p1119_p7, %p1309_p6 }
 0x219   : > { %p1117_p9 = pneg %p1116_p8 }
 0x21b   : > { %1208 = dma.done.wait (%p1117_p9), %s1019_s26, 192  }
 0x21c   : > { %1210 = vsyncadd (%p1117_p9), %s1019_s26, 4294967104  ;;  %p16_p10 = scmp.ge.s32.totalorder %s1292_s24, 4   ;;  %s1619_s18 = smov %s1217_s19 }
 0x21d   : > { %s1620_s19 = smov %s1221_s20  ;;  %s1621_s20 = smov %s1303_s27 }
 0x21e   : > { %s1622_s21 = smov %s1292_s24  ;;  %18 = sbr.rel (!%p16_p10) target bundleno = 3 (0x3), region = 95 }
 0x223   :  { %1025 = vsyncpa [#allocation3], 1 }
 0x224   :  { %1027 = vsyncpa [#allocation3 + $0x1], 1 }

</bundles_post_ra>
